<compile_context>
chip_gen: v7x
topology: tpu7x:2x2x1
jax: 0.10.0
libtpu: 0.0.40
codegen_flags: <defaults>
</compile_context>

<pallas_src>
import functools

import jax
import jax.numpy as jnp
from jax.experimental import pallas as pl
from jax.experimental.pallas import tpu as pltpu


def _round_up(x, n):
    return ((x + n - 1) // n) * n


def nnlm_kernel(x_ref, w13t_ref, w2t_ref, ones_ref, bias_ref, out_ref, *, nh_pad):
    # x_ref: (TB, K_pad) bf16; w13t_ref: (K_pad, NH_pad + NC_pad) bf16
    x = x_ref[...]
    # Single fused MXU matmul for both x-contractions, f32 accumulate.
    xw = jnp.dot(x, w13t_ref[...], preferred_element_type=jnp.float32)
    h1 = xw[:, :nh_pad]                       # (TB, NH_pad)  -> hidden1(Xf)
    h3 = xw[:, nh_pad:]                       # (TB, NC_pad)  -> hidden3(Xf)
    # tanh goes to the EUP slot (not the binding unit); keep it in-kernel.
    t = jnp.tanh(ones_ref[...] + h1)          # (TB, NH_pad) f32
    h2 = jnp.dot(t.astype(w2t_ref.dtype), w2t_ref[...],
                 preferred_element_type=jnp.float32)          # (TB, NC_pad)
    # Lane-dense (128-multiple) output -> unmasked stores.
    out_ref[...] = (bias_ref[...] + h3 + h2).astype(out_ref.dtype)


def prepare_nnlm_params(w1, w2, w3, ones_p, bias_p, *, n_step, n_hidden, m, n_class,
                        compute_dtype=jnp.bfloat16):
    """One-time prep: transpose, zero-pad to 128-lane multiples, cast to bf16.

    Done once at init so no per-call transpose / pad ops hit HBM.
    Padded weight columns/rows are zero so they cannot contaminate real outputs.
    """
    K = n_step * m
    K_pad = _round_up(K, 128)
    NH_pad = _round_up(n_hidden, 128)
    NC_pad = _round_up(n_class, 128)

    w1t = jnp.zeros((K_pad, NH_pad), jnp.float32).at[:K, :n_hidden].set(w1.T)
    w3t = jnp.zeros((K_pad, NC_pad), jnp.float32).at[:K, :n_class].set(w3.T)
    w13t = jnp.concatenate([w1t, w3t], axis=1).astype(compute_dtype)  # (K_pad, NH_pad+NC_pad)
    w2t = (jnp.zeros((NH_pad, NC_pad), jnp.float32)
           .at[:n_hidden, :n_class].set(w2.T).astype(compute_dtype))
    ones2d = jnp.zeros((1, NH_pad), jnp.float32).at[0, :n_hidden].set(ones_p)
    bias2d = jnp.zeros((1, NC_pad), jnp.float32).at[0, :n_class].set(bias_p)

    return dict(w13t=w13t, w2t=w2t, ones2d=ones2d, bias2d=bias2d,
                K=K, K_pad=K_pad, NH_pad=NH_pad, NC_pad=NC_pad,
                n_class=n_class, compute_dtype=compute_dtype)


def nnlm_forward(X_ids, emb_table, params):
    """X_ids: int32 (B, n_step). Returns (word_embeds, output) like the PyTorch module."""
    B, n_step = X_ids.shape
    m = emb_table.shape[1]
    K, K_pad = params["K"], params["K_pad"]
    NH_pad, NC_pad = params["NH_pad"], params["NC_pad"]
    cdt = params["compute_dtype"]
    assert K == n_step * m

    # Embedding lookup stays in plain JAX (word_embeds must be returned anyway).
    # TODO(synk): could fold the gather into the kernel via PrefetchScalarGridSpec
    # to remove the duplicate HBM read of x_flat at large B.
    word_embeds = jnp.take(emb_table, X_ids, axis=0)          # (B, n_step, m)

    # Batch tiling: TB rows per grid step, batch axis is "parallel" (megacore).
    B_pad = _round_up(B, 8)
    TB = min(256, B_pad)
    B_pad = _round_up(B_pad, TB)
    grid = (B_pad // TB,)

    x_flat = word_embeds.reshape(B, K).astype(cdt)
    x_pad = jnp.zeros((B_pad, K_pad), cdt).at[:B, :K].set(x_flat)

    N_fused = NH_pad + NC_pad
    out_pad = pl.pallas_call(
        functools.partial(nnlm_kernel, nh_pad=NH_pad),
        out_shape=jax.ShapeDtypeStruct((B_pad, NC_pad), jnp.float32),
        grid=grid,
        in_specs=[
            pl.BlockSpec((TB, K_pad), lambda i: (i, 0)),        # x: tiled over batch
            pl.BlockSpec((K_pad, N_fused), lambda i: (0, 0)),   # fused [W1t|W3t], resident
            pl.BlockSpec((NH_pad, NC_pad), lambda i: (0, 0)),   # W2t, resident
            pl.BlockSpec((1, NH_pad), lambda i: (0, 0)),        # ones (broadcast)
            pl.BlockSpec((1, NC_pad), lambda i: (0, 0)),        # bias (broadcast)
        ],
        out_specs=pl.BlockSpec((TB, NC_pad), lambda i: (i, 0)),
        compiler_params=pltpu.CompilerParams(
            dimension_semantics=("parallel",)),
    )(x_pad, params["w13t"], params["w2t"], params["ones2d"], params["bias2d"])

    output = out_pad[:B, :params["n_class"]]
    return word_embeds, output


if __name__ == "__main__":
    # Small shapes consistent with the module.
    n_class, n_step, n_hidden, m = 32, 8, 32, 16
    B = 8

    key = jax.random.PRNGKey(0)
    k_emb, k_w1, k_w2, k_w3, k_ids = jax.random.split(key, 5)

    emb_table = jax.random.normal(k_emb, (n_class, m), dtype=jnp.float32)
    w1 = jax.random.normal(k_w1, (n_hidden, n_step * m), dtype=jnp.float32) * 0.05
    w2 = jax.random.normal(k_w2, (n_class, n_hidden), dtype=jnp.float32) * 0.05
    w3 = jax.random.normal(k_w3, (n_class, n_step * m), dtype=jnp.float32) * 0.05
    ones_p = jnp.ones((n_hidden,), dtype=jnp.float32)
    bias_p = jnp.ones((n_class,), dtype=jnp.float32)

    X_ids = jax.random.randint(k_ids, (B, n_step), 0, n_class, dtype=jnp.int32)

    params = prepare_nnlm_params(
        w1, w2, w3, ones_p, bias_p,
        n_step=n_step, n_hidden=n_hidden, m=m, n_class=n_class)

    word_embeds, output = nnlm_forward(X_ids, emb_table, params)
    jax.block_until_ready((word_embeds, output))

    # Reference 1: emulate the bf16-operand / f32-accumulate path (tight check).
    xf32 = jnp.take(emb_table, X_ids, axis=0).reshape(B, n_step * m)
    xb = xf32.astype(jnp.bfloat16).astype(jnp.float32)
    w1b = w1.astype(jnp.bfloat16).astype(jnp.float32)
    w2b = w2.astype(jnp.bfloat16).astype(jnp.float32)
    w3b = w3.astype(jnp.bfloat16).astype(jnp.float32)
    t_ref = jnp.tanh(ones_p + xb @ w1b.T)
    tb = t_ref.astype(jnp.bfloat16).astype(jnp.float32)
    ref_bf16 = bias_p + xb @ w3b.T + tb @ w2b.T
    # Reference 2: pure f32 PyTorch math (loose check for the bf16 cast).
    ref_f32 = bias_p + xf32 @ w3.T + jnp.tanh(ones_p + xf32 @ w1.T) @ w2.T

    assert output.shape == (B, n_class)
    assert word_embeds.shape == (B, n_step, m)
    assert jnp.allclose(output, ref_bf16, atol=1e-2, rtol=1e-2)
    assert jnp.allclose(output, ref_f32, atol=5e-2, rtol=5e-2)

    print("KERNEL_OK")
</pallas_src>

<mosaic_0001>
module attributes {stable_mosaic.version = 11 : i64} {
  func.func @nnlm_kernel(%arg0: i32, %arg1: memref<8x128xbf16, #tpu.memory_space<vmem>>, %arg2: memref<128x256xbf16, #tpu.memory_space<vmem>>, %arg3: memref<128x128xbf16, #tpu.memory_space<vmem>>, %arg4: memref<1x128xf32, #tpu.memory_space<vmem>>, %arg5: memref<1x128xf32, #tpu.memory_space<vmem>>, %arg6: memref<8x128xf32, #tpu.memory_space<vmem>>) attributes {dimension_semantics = [#tpu.dimension_semantics<parallel>], iteration_bounds = array<i64: 1>, scalar_prefetch = 0 : i64, scratch_operands = 0 : i64, tpu.core_type = #tpu.core_type<tc>, window_params = [{transform_indices = @transform_0, window_bounds = array<i64: 8, 128>}, {pipeline_mode = #tpu.pipeline_mode<synchronous>, transform_indices = @transform_1, window_bounds = array<i64: 128, 256>}, {pipeline_mode = #tpu.pipeline_mode<synchronous>, transform_indices = @transform_2, window_bounds = array<i64: 128, 128>}, {pipeline_mode = #tpu.pipeline_mode<synchronous>, transform_indices = @transform_3, window_bounds = array<i64: 1, 128>}, {pipeline_mode = #tpu.pipeline_mode<synchronous>, transform_indices = @transform_4, window_bounds = array<i64: 1, 128>}, {transform_indices = @transform_5, window_bounds = array<i64: 8, 128>}]} {
    %c0 = arith.constant 0 : index
    %c0_0 = arith.constant 0 : index
    %0 = vector.load %arg1[%c0, %c0_0] : memref<8x128xbf16, #tpu.memory_space<vmem>>, vector<8x128xbf16>
    %c0_1 = arith.constant 0 : index
    %c0_2 = arith.constant 0 : index
    %1 = vector.load %arg2[%c0_1, %c0_2] : memref<128x256xbf16, #tpu.memory_space<vmem>>, vector<128x256xbf16>
    %cst = arith.constant dense<0.000000e+00> : vector<8x256xf32>
    %2 = tpu.matmul %0, %1, %cst {dimension_numbers = #tpu.dot_dimension_numbers<[1], [0], [0], [1], [0, 0, 1, 1], [], []>} : vector<8x128xbf16>, vector<128x256xbf16>, vector<8x256xf32> -> vector<8x256xf32>
    %3 = vector.extract_strided_slice %2 {offsets = [0, 0], sizes = [8, 128], strides = [1, 1]} : vector<8x256xf32> to vector<8x128xf32>
    %4 = vector.extract_strided_slice %2 {offsets = [0, 128], sizes = [8, 128], strides = [1, 1]} : vector<8x256xf32> to vector<8x128xf32>
    %c0_3 = arith.constant 0 : index
    %c0_4 = arith.constant 0 : index
    %5 = vector.load %arg4[%c0_3, %c0_4] : memref<1x128xf32, #tpu.memory_space<vmem>>, vector<1x128xf32>
    %6 = vector.broadcast %5 : vector<1x128xf32> to vector<8x128xf32>
    %7 = arith.addf %6, %3 : vector<8x128xf32>
    %8 = math.tanh %7 : vector<8x128xf32>
    %9 = arith.truncf %8 : vector<8x128xf32> to vector<8x128xbf16>
    %c0_5 = arith.constant 0 : index
    %c0_6 = arith.constant 0 : index
    %10 = vector.load %arg3[%c0_5, %c0_6] : memref<128x128xbf16, #tpu.memory_space<vmem>>, vector<128x128xbf16>
    %cst_7 = arith.constant dense<0.000000e+00> : vector<8x128xf32>
    %11 = tpu.matmul %9, %10, %cst_7 {dimension_numbers = #tpu.dot_dimension_numbers<[1], [0], [0], [1], [0, 0, 1, 1], [], []>} : vector<8x128xbf16>, vector<128x128xbf16>, vector<8x128xf32> -> vector<8x128xf32>
    %c0_8 = arith.constant 0 : index
    %c0_9 = arith.constant 0 : index
    %12 = vector.load %arg5[%c0_8, %c0_9] : memref<1x128xf32, #tpu.memory_space<vmem>>, vector<1x128xf32>
    %13 = vector.broadcast %12 : vector<1x128xf32> to vector<8x128xf32>
    %14 = arith.addf %13, %4 : vector<8x128xf32>
    %15 = arith.addf %14, %11 : vector<8x128xf32>
    %c0_10 = arith.constant 0 : index
    %c0_11 = arith.constant 0 : index
    %16 = vector.load %arg6[%c0_10, %c0_11] : memref<8x128xf32, #tpu.memory_space<vmem>>, vector<8x128xf32>
    tpu.vector_store %arg6[%c0_10, %c0_11], %15 {strides = array<i32>} : memref<8x128xf32, #tpu.memory_space<vmem>>, vector<8x128xf32>,
    return
  }
  func.func @transform_0(%arg0: i32) -> (i32, i32) {
    %c0_i32 = arith.constant 0 : i32
    %c0_i32_0 = arith.constant 0 : i32
    return %arg0, %c0_i32 : i32, i32
  }
  func.func @transform_1(%arg0: i32) -> (i32, i32) {
    %c0_i32 = arith.constant 0 : i32
    %c0_i32_0 = arith.constant 0 : i32
    %c0_i32_1 = arith.constant 0 : i32
    return %c0_i32, %c0_i32_0 : i32, i32
  }
  func.func @transform_2(%arg0: i32) -> (i32, i32) {
    %c0_i32 = arith.constant 0 : i32
    %c0_i32_0 = arith.constant 0 : i32
    %c0_i32_1 = arith.constant 0 : i32
    return %c0_i32, %c0_i32_0 : i32, i32
  }
  func.func @transform_3(%arg0: i32) -> (i32, i32) {
    %c0_i32 = arith.constant 0 : i32
    %c0_i32_0 = arith.constant 0 : i32
    %c0_i32_1 = arith.constant 0 : i32
    return %c0_i32, %c0_i32_0 : i32, i32
  }
  func.func @transform_4(%arg0: i32) -> (i32, i32) {
    %c0_i32 = arith.constant 0 : i32
    %c0_i32_0 = arith.constant 0 : i32
    %c0_i32_1 = arith.constant 0 : i32
    return %c0_i32, %c0_i32_0 : i32, i32
  }
  func.func @transform_5(%arg0: i32) -> (i32, i32) {
    %c0_i32 = arith.constant 0 : i32
    %c0_i32_0 = arith.constant 0 : i32
    return %arg0, %c0_i32 : i32, i32
  }
}

</mosaic_0001>

<bundles_post_ra>
// kernel: tpu_custom_call.1
= control target key start
LH: loop header
LB: loop body
LE: loop exit
PB: predicated region body
PF: predicated region fallthrough
CT: control target
= control target key end

     0   :  { %10 = vsyncpa [#allocation3], 0  ;;  %s628_s0 = inlined_call_operand.hbm [shape: bf16[8,128], index: 0, kind: input, shape index: {}]   ;;  %s629_s1 = inlined_call_operand.hbm [shape: bf16[128,256], index: 1, kind: input, shape index: {}]   ;;  %s630_s2 = inlined_call_operand.hbm [shape: bf16[128,128], index: 2, kind: input, shape index: {}]   ;;  %s631_s3 = inlined_call_operand.vmem [shape: f32[1,128], index: 3, kind: input, shape index: {}]   ;;  %s632_s4 = inlined_call_operand.vmem [shape: f32[1,128], index: 4, kind: input, shape index: {}]   ;;  %s633_s5 = inlined_call_operand.hbm [shape: f32[8,128], index: 5, kind: output, shape index: {}]  }
   0x1   :  { %11 = vsyncpa [#allocation6], 0 }
   0x2   :  { %12 = vsyncpa [#allocation4], 0  ;;  %s533_s18 = smov [#allocation5]   ;;  %s439_s22 = scalar_lea.hbm %s629_s1, 2048 }
   0x3   :  { %s28_s19 = sshll.u32 %s533_s18, 4  ;;  %p440_p0 = scmp.ne.s32.totalorder %s629_s1, %s439_s22  ;;  %s29_s19 = int_to_ptr.vmem [resolvable:$true] %s28_s19 }
   0x4   :  { %p443_p1 = scmp.lt.u32.totalorder %s439_s22, %s629_s1 }
   0x6   :  { %p445_p2 = pnand %p443_p1, %p440_p0 }
   0x8   :  { %448 = shalt.err (!%p445_p2)
}
   0x9   :  { %s449_s27 = scalar_lea.vmem %s29_s19, 2048  ;;  %p454_p4 = scmp.lt.s32.totalorder %s29_s19, %s29_s19 }
   0xa   :  { %p450_p3 = scmp.ne.s32.totalorder %s29_s19, %s449_s27  ;;  %p455_p5 = scmp.lt.s32.totalorder %s449_s27, %s449_s27 }
   0xc   :  { %p456_p6 = por %p455_p5, %p454_p4 }
   0xe   :  { %p457_p7 = pnand %p456_p6, %p450_p3 }
  0x10   :  { %460 = shalt.err (!%p457_p7)
}
  0x11   :  { %s534_s28 = smov 128   ;;  %s535_s29 = smov 8  }
  0x12   :  { %34 = dma.hbm_to_vmem [thread:$0]  %s629_s1, 2048, %s29_s19, [#allocation6], %s534_s28, %s534_s28, %s535_s29  }
  0x13   :  { %s536_s7 = smov [#allocation2]   ;;  %s537_s9 = smov [#allocation7]  }
  0x14   :  { %s19_s8 = sshll.u32 %s536_s7, 4  ;;  %s40_s10 = sshll.u32 %s537_s9, 4  ;;  %s20_s8 = int_to_ptr.vmem [resolvable:$true] %s19_s8  ;;  %s41_s10 = int_to_ptr.vmem [resolvable:$true] %s40_s10 }
  0x15   :  { %s461_s13 = scalar_lea.hbm %s628_s0, 64 }
  0x16   :  { %p462_p8 = scmp.ne.s32.totalorder %s628_s0, %s461_s13  ;;  %p465_p9 = scmp.lt.u32.totalorder %s461_s13, %s628_s0 }
  0x18   :  { %p467_p10 = pnand %p465_p9, %p462_p8 }
  0x1a   :  { %470 = shalt.err (!%p467_p10)
}
  0x1b   :  { %s471_s1 = scalar_lea.vmem %s20_s8, 64  ;;  %p476_p12 = scmp.lt.s32.totalorder %s20_s8, %s20_s8 }
  0x1c   :  { %p472_p11 = scmp.ne.s32.totalorder %s20_s8, %s471_s1  ;;  %p477_p13 = scmp.lt.s32.totalorder %s471_s1, %s471_s1 }
  0x1e   :  { %p478_p0 = por %p477_p13, %p476_p12 }
  0x20   :  { %p479_p1 = pnand %p478_p0, %p472_p11 }
  0x22   :  { %482 = shalt.err (!%p479_p1)
}
  0x23   :  { %22 = dma.hbm_to_vmem [thread:$0]  %s628_s0, 64, %s20_s8, [#allocation3]  }
  0x24   :  { %s483_s22 = scalar_lea.hbm %s630_s2, 1024 }
  0x25   :  { %p484_p2 = scmp.ne.s32.totalorder %s630_s2, %s483_s22  ;;  %p487_p3 = scmp.lt.u32.totalorder %s483_s22, %s630_s2 }
  0x27   :  { %p489_p4 = pnand %p487_p3, %p484_p2 }
  0x29   :  { %492 = shalt.err (!%p489_p4)
}
  0x2a   :  { %s493_s27 = scalar_lea.vmem %s41_s10, 1024  ;;  %p498_p6 = scmp.lt.s32.totalorder %s41_s10, %s41_s10 }
  0x2b   :  { %p494_p5 = scmp.ne.s32.totalorder %s41_s10, %s493_s27  ;;  %p499_p7 = scmp.lt.s32.totalorder %s493_s27, %s493_s27 }
  0x2d   :  { %p500_p8 = por %p499_p7, %p498_p6 }
  0x2f   :  { %p501_p9 = pnand %p500_p8, %p494_p5 }
  0x31   :  { %504 = shalt.err (!%p501_p9)
}
  0x32   :  { %s538_s0 = smov 64   ;;  %s539_s28 = smov 4  }
  0x33   :  { %46 = dma.hbm_to_vmem [thread:$0]  %s630_s2, 1024, %s41_s10, [#allocation6], %s538_s0, %s538_s0, %s539_s28  }
  0x34   :  { %527 = dma.done.wait [#allocation3], 64  }
  0x35   :  { %528 = vsyncadd [#allocation3], 4294967232 }
  0x36   :  { %529 = dma.done.wait [#allocation6], 3072  }
  0x37   :  { %530 = vsyncadd [#allocation6], 4294964224  ;;  %v540_v0 = vmov 0   ;;  %v541_v1 = vmov 0.0   ;;  %v405_v2 = vld [vmem:[#allocation5 + $0x4] ss:$8 sps:$4 sm:$0xff]  }
  0x38   :  { %190 = vmatprep.mubr.bf16.mxu0 %v540_v0  ;;  %374 = vmatprep.subr.bf16.mxu1 %v541_v1  ;;  %v407_v3 = vld [vmem:[#allocation5] ss:$8 sps:$4 sm:$0xff]   ;;  %v408_v4 = vld [vmem:[#allocation5 + $0x14] ss:$8 sps:$4 sm:$0xff]   ;;  %v410_v5 = vld [vmem:[#allocation5 + $0x10] ss:$8 sps:$4 sm:$0xff]  }
  0x39   :  { %158 = vmatprep.subr.bf16.mxu0 %v405_v2  ;;  %v411_v6 = vld [vmem:[#allocation5 + $0x24] ss:$8 sps:$4 sm:$0xff]   ;;  %v413_v7 = vld [vmem:[#allocation5 + $0x20] ss:$8 sps:$4 sm:$0xff]   ;;  %v414_v8 = vld [vmem:[#allocation5 + $0x34] ss:$8 sps:$4 sm:$0xff]  }
  0x3a   :  { %159 = vmatpush1.bf16.msra.mxu0 %v407_v3  ;;  %v416_v9 = vld [vmem:[#allocation5 + $0x30] ss:$8 sps:$4 sm:$0xff]   ;;  %v429_v10 = vld [vmem:[#allocation7] sm:$0xff]   ;;  %v430_v13 = vld [vmem:[#allocation7 + $0x8] sm:$0xff]   ;;  %vm542_vm0 = vmmov 0   ;;  %s543_s9 = smov [#allocation8]  }
  0x3b   :  { %160 = vmatprep.subr.bf16.mxu0 %v408_v4  ;;  %v417_v11 = vld [vmem:[#allocation5 + $0x44] ss:$8 sps:$4 sm:$0xff]   ;;  %v419_v12 = vld [vmem:[#allocation5 + $0x40] ss:$8 sps:$4 sm:$0xff]   ;;  %375 = vmatpush3.bf16.msra.mxu1 %v429_v10  ;;  %v420_v14 = vld [vmem:[#allocation5 + $0x54] ss:$8 sps:$4 sm:$0xff]  }
  0x3c   :  { %376 = vmatprep.subr.bf16.mxu1 %v541_v1  ;;  %v431_v15 = vld [vmem:[#allocation7 + $0x10] sm:$0xff]   ;;  %v423_v17 = vld [vmem:[#allocation5 + $0x64] ss:$8 sps:$4 sm:$0xff]   ;;  %v432_v18 = vld [vmem:[#allocation7 + $0x18] sm:$0xff]   ;;  %390 = vmatprep.mubr.msk.bf16.mxu1 %vm542_vm0, %v541_v1  ;;  %s329_s10 = sshll.u32 %s543_s9, 4  ;;  %s330_s10 = int_to_ptr.vmem [resolvable:$true] %s329_s10 }
  0x3d   :  { %v422_v16 = vld [vmem:[#allocation5 + $0x50] ss:$8 sps:$4 sm:$0xff]   ;;  %v425_v19 = vld [vmem:[#allocation5 + $0x60] ss:$8 sps:$4 sm:$0xff]   ;;  %v426_v20 = vld [vmem:[#allocation5 + $0x74] ss:$8 sps:$4 sm:$0xff]   ;;  %p510_p11 = scmp.lt.s32.totalorder %s330_s10, %s330_s10 }
  0x3e   :  { %161 = vmatpush1.bf16.msra.mxu0 %v410_v5  ;;  %v428_v21 = vld [vmem:[#allocation5 + $0x70] ss:$8 sps:$4 sm:$0xff]   ;;  %v61_v22 = vld [vmem:[#allocation2] sm:$0xf]  ;;  %v433_v23 = vld [vmem:[#allocation7 + $0x20] sm:$0xff]  }
  0x3f   :  { %162 = vmatprep.subr.bf16.mxu0 %v411_v6  ;;  %377 = vmatpush3.bf16.msra.mxu1 %v430_v13  ;;  %v434_v24 = vld [vmem:[#allocation7 + $0x28] sm:$0xff]   ;;  %v435_v25 = vld [vmem:[#allocation7 + $0x30] sm:$0xff]   ;;  %v436_v26 = vld [vmem:[#allocation7 + $0x38] sm:$0xff]  }
  0x40   :  { %378 = vmatprep.subr.bf16.mxu1 %v541_v1  ;;  %v355_v27 = vld [vmem:[%s631_s3] ss:$0 sm:$0xff]  ;;  %s505_s3 = scalar_lea.vmem %s330_s10, 128 }
  0x41   :  { %v364_v35 = vld [vmem:[%s632_s4] ss:$0 sm:$0xff]  ;;  %p506_p10 = scmp.ne.s32.totalorder %s330_s10, %s505_s3  ;;  %p511_p12 = scmp.lt.s32.totalorder %s505_s3, %s505_s3 }
  0x42   :  { %163 = vmatpush1.bf16.msra.mxu0 %v413_v7 }
  0x43   :  { %164 = vmatprep.subr.bf16.mxu0 %v414_v8  ;;  %379 = vmatpush3.bf16.msra.mxu1 %v431_v15  ;;  %p512_p13 = por %p511_p12, %p510_p11 }
  0x44   :  { %380 = vmatprep.subr.bf16.mxu1 %v541_v1 }
  0x45   :  { %p513_p0 = pnand %p512_p13, %p506_p10 }
  0x46   :  { %165 = vmatpush1.bf16.msra.mxu0 %v416_v9 }
  0x47   :  { %166 = vmatprep.subr.bf16.mxu0 %v417_v11  ;;  %381 = vmatpush3.bf16.msra.mxu1 %v432_v18 }
  0x48   :  { %382 = vmatprep.subr.bf16.mxu1 %v541_v1 }
  0x4a   :  { %167 = vmatpush1.bf16.msra.mxu0 %v419_v12 }
  0x4b   :  { %168 = vmatprep.subr.bf16.mxu0 %v420_v14  ;;  %383 = vmatpush3.bf16.msra.mxu1 %v433_v23 }
  0x4c   :  { %384 = vmatprep.subr.bf16.mxu1 %v541_v1 }
  0x4e   :  { %169 = vmatpush1.bf16.msra.mxu0 %v422_v16 }
  0x4f   :  { %170 = vmatprep.subr.bf16.mxu0 %v423_v17  ;;  %385 = vmatpush3.bf16.msra.mxu1 %v434_v24 }
  0x50   :  { %386 = vmatprep.subr.bf16.mxu1 %v541_v1 }
  0x52   :  { %171 = vmatpush1.bf16.msra.mxu0 %v425_v19 }
  0x53   :  { %172 = vmatprep.subr.bf16.mxu0 %v426_v20  ;;  %387 = vmatpush3.bf16.msra.mxu1 %v435_v25 }
  0x54   :  { %388 = vmatprep.subr.bf16.mxu1 %v541_v1 }
  0x56   :  { %173 = vmatpush1.bf16.msra.mxu0 %v428_v21 }
  0x57   :  { %389 = vmatpush3.bf16.msra.mxu1 %v436_v26 }
  0x59   :  { %191 = vmatmul.mubr.bf16.vlgmr.msra.gmra.mrb[0].mxu0 %v61_v22 }
 0x12c   :  { %v192_v28 = vpop.f32.mrb[0].mxu0 }
 0x12d   :  { %v206_v29 = vadd.f32 %v355_v27, %v192_v28  ;;  %v194_v30 = vpop.f32.mrb[1].mxu0 }
 0x12e   :  { %v196_v31 = vpop.f32.mrb[2].mxu0  ;;  %v320_v36 = vadd.f32 %v364_v35, %v194_v30 }
 0x12f   :  { %437 = vtanh.f32 %v206_v29  ;;  %v197_v32 = vpop.f32.mrb[3].mxu0 }
 0x139   :  { %v438_v33 = vpop.eup %437 }
 0x13a   :  { %v208_v34 = vpack.c.bf16 %v438_v33, %v438_v33 }
 0x13c   :  { %391 = vmatmul.mubr.bf16.vlgmr.msra.gmra.mrb[0].mxu1 %v208_v34 }
 0x20f   :  { %v307_v37 = vpop.f32.mrb[0].mxu1 }
 0x210   :  { %v321_v38 = vadd.f32 %v320_v36, %v307_v37  ;;  %v392_v39 = vpop.f32.mrb[1].mxu1 }
 0x211   :  { %v310_v40 = vpop.f32.mrb[2].mxu1 }
 0x212   :  { %322 = vst [vmem:[#allocation8] sm:$0xff] %v321_v38  ;;  %v393_v41 = vpop.f32.mrb[3].mxu1 }
 0x213   :  { %516 = shalt.err (!%p513_p0)
}
 0x214   :  { %s517_s4 = scalar_lea.hbm %s633_s5, 128 }
 0x215   :  { %p518_p1 = scmp.ne.s32.totalorder %s633_s5, %s517_s4  ;;  %p521_p2 = scmp.lt.u32.totalorder %s517_s4, %s633_s5 }
 0x217   :  { %p523_p3 = pnand %p521_p2, %p518_p1 }
 0x219   :  { %526 = shalt.err (!%p523_p3)
}
 0x21a   :  { %332 = dma.vmem_to_hbm [thread:$0]  %s330_s10, 128, %s633_s5, [#allocation4]  }
 0x21b   :  { %531 = dma.done.wait [#allocation4], 128  }
 0x21c   :  { %532 = vsyncadd [#allocation4], 4294967168 }
 0x21d   :  { %336 = vsyncpa [#allocation3], 1 }
 0x21e   :  { %337 = vsyncpa [#allocation6], 1 }
 0x21f   :  { %338 = vsyncpa [#allocation4], 1 }

</bundles_post_ra>
